<compile_context>
chip_gen: v7x
topology: tpu7x:2x2x1
jax: 0.10.0
libtpu: 0.0.40
codegen_flags: <defaults>
</compile_context>

<pallas_src>
import jax
import jax.numpy as jnp
from jax import lax
from jax.experimental import pallas as pl
from jax.experimental.pallas import tpu as pltpu

P_DROP = 0.3
KEEP_SCALE = 1.0 / (1.0 - P_DROP)
DROP_THRESH_24 = int(round(P_DROP * (1 << 24)))   # integer-compare dropout threshold

D_IN, D_H1, D_H2, D_H3, D_OUT = 784, 128, 256, 512, 10
D_IN_PAD = 896     # 784 -> 7*128 (lane-aligned K for the first matmul)
D_OUT_PAD = 128    # 10  -> 128   (lane-dense output stores)
NEG_BIG = -1e30    # padded-class bias -> softmax weight exactly 0


def _round_up(n, m):
    return (n + m - 1) // m * m


def _pick_tile(b):
    # 256 fills the 256-wide MXU on v6e/v7x; tiny batches use one 8-aligned tile.
    return 256 if b >= 256 else _round_up(b, 8)


def _dropout(h, seed_u32, layer_salt, row_off):
    """Inverted dropout with a stateless per-element hash PRNG.

    Pure uint32 VPU ops (mul/xor/shift) + one integer compare; works under both
    Mosaic lowering and CPU interpret mode (unlike pltpu.prng_seed).
    """
    shape = h.shape
    rows = (lax.broadcasted_iota(jnp.int32, shape, 0) + row_off).astype(jnp.uint32)
    cols = lax.broadcasted_iota(jnp.int32, shape, 1).astype(jnp.uint32)
    x = rows * jnp.uint32(shape[1]) + cols
    x = x + seed_u32 * jnp.uint32(0x9E3779B9) + jnp.uint32(layer_salt) * jnp.uint32(0x85EBCA6B)
    # lowbias32-style avalanche
    x = x ^ (x >> 16)
    x = x * jnp.uint32(0x7FEB352D)
    x = x ^ (x >> 15)
    x = x * jnp.uint32(0x846CA68B)
    x = x ^ (x >> 16)
    # top 24 bits vs integer threshold: P(keep) = 1 - P_DROP (both operands < 2^31,
    # so signed/unsigned compare semantics agree)
    keep = (x >> 8) >= jnp.uint32(DROP_THRESH_24)
    return jnp.where(keep, h * KEEP_SCALE, 0.0)


def mlp_kernel(seed_ref,
               x_ref,
               w1_ref, b1_ref,
               w2_ref, b2_ref,
               w3_ref, b3_ref,
               w4_ref, b4_ref,
               out_ref):
    tb = x_ref.shape[0]
    row_off = pl.program_id(0) * tb
    seed_u32 = seed_ref[0].astype(jnp.uint32)

    # fc1 + relu + dropout   (bf16 MXU operands, f32 accumulation/elementwise)
    h = jnp.dot(x_ref[...], w1_ref[...], preferred_element_type=jnp.float32) + b1_ref[...]
    h = jnp.maximum(h, 0.0)
    h = _dropout(h, seed_u32, 1, row_off)

    # fc2 + relu + dropout
    h = jnp.dot(h.astype(jnp.bfloat16), w2_ref[...], preferred_element_type=jnp.float32) + b2_ref[...]
    h = jnp.maximum(h, 0.0)
    h = _dropout(h, seed_u32, 2, row_off)

    # fc3 + relu + dropout
    h = jnp.dot(h.astype(jnp.bfloat16), w3_ref[...], preferred_element_type=jnp.float32) + b3_ref[...]
    h = jnp.maximum(h, 0.0)
    h = _dropout(h, seed_u32, 3, row_off)

    # fc4 + softmax over the class axis (padded classes carry bias -1e30 -> exp()=0)
    logits = jnp.dot(h.astype(jnp.bfloat16), w4_ref[...], preferred_element_type=jnp.float32) + b4_ref[...]
    m = jnp.max(logits, axis=-1, keepdims=True)
    e = jnp.exp(logits - m)
    out_ref[...] = e / jnp.sum(e, axis=-1, keepdims=True)


def init_params(key):
    """Deterministic init mimicking torch.nn.Linear default (U[-1/sqrt(fan_in), +])."""
    dims = [(D_IN, D_H1), (D_H1, D_H2), (D_H2, D_H3), (D_H3, D_OUT)]
    params = []
    for fan_in, fan_out in dims:
        kw, kb, key = jax.random.split(key, 3)
        bound = 1.0 / (fan_in ** 0.5)
        # stored as (in, out) so the kernel does x @ W
        w = jax.random.uniform(kw, (fan_in, fan_out), jnp.float32, -bound, bound)
        b = jax.random.uniform(kb, (1, fan_out), jnp.float32, -bound, bound)
        params.append((w, b))
    return params


@jax.jit
def mymodel_forward(x_nchw, params_flat, seed):
    w1, b1, w2, b2, w3, b3, w4, b4 = params_flat
    B = x_nchw.shape[0]
    TB = _pick_tile(B)
    B_pad = _round_up(B, TB)

    # x.reshape((B, 784)) + pad features 784->896 and batch B->B_pad, cast bf16
    x = x_nchw.reshape(B, D_IN).astype(jnp.float32)
    x = jnp.pad(x, ((0, B_pad - B), (0, D_IN_PAD - D_IN))).astype(jnp.bfloat16)

    # bf16 weights; w1 rows padded with zeros, w4 cols padded with zeros,
    # b4 padded with -1e30 so padded classes vanish in the softmax
    w1p = jnp.pad(w1, ((0, D_IN_PAD - D_IN), (0, 0))).astype(jnp.bfloat16)
    w2b = w2.astype(jnp.bfloat16)
    w3b = w3.astype(jnp.bfloat16)
    w4p = jnp.pad(w4, ((0, 0), (0, D_OUT_PAD - D_OUT))).astype(jnp.bfloat16)
    b4p = jnp.pad(b4, ((0, 0), (0, D_OUT_PAD - D_OUT)), constant_values=NEG_BIG)

    seed_arr = jnp.reshape(seed.astype(jnp.int32), (1,))

    resident = lambda i: (0, 0)   # weights/biases stay in VMEM across the batch grid

    out = pl.pallas_call(
        mlp_kernel,
        out_shape=jax.ShapeDtypeStruct((B_pad, D_OUT_PAD), jnp.float32),
        grid=(B_pad // TB,),
        in_specs=[
            pl.BlockSpec(memory_space=pltpu.MemorySpace.SMEM),        # seed
            pl.BlockSpec((TB, D_IN_PAD), lambda i: (i, 0)),           # x tile
            pl.BlockSpec((D_IN_PAD, D_H1), resident), pl.BlockSpec((1, D_H1), resident),
            pl.BlockSpec((D_H1, D_H2), resident),     pl.BlockSpec((1, D_H2), resident),
            pl.BlockSpec((D_H2, D_H3), resident),     pl.BlockSpec((1, D_H3), resident),
            pl.BlockSpec((D_H3, D_OUT_PAD), resident), pl.BlockSpec((1, D_OUT_PAD), resident),
        ],
        out_specs=pl.BlockSpec((TB, D_OUT_PAD), lambda i: (i, 0)),
        compiler_params=pltpu.CompilerParams(
            dimension_semantics=("parallel",)),
    )(seed_arr, x, w1p, b1, w2b, b2, w3b, b3, w4p, b4p)

    # drop batch padding and the lane padding of the class axis
    return out[:B, :D_OUT]


if __name__ == "__main__":
    key = jax.random.PRNGKey(0)
    kx, kp = jax.random.split(key)

    B = 8
    x = jax.random.normal(kx, (B, 1, 28, 28), dtype=jnp.float32)   # NCHW, like FashionMNIST

    params = init_params(kp)
    params_flat = tuple(p for wb in params for p in wb)

    seed = jnp.int32(1234)
    out = mymodel_forward(x, params_flat, seed)
    out = jax.block_until_ready(out)

    assert out.shape == (B, 10), out.shape
    # softmax rows should sum to ~1
    row_sums = jnp.sum(out, axis=1)
    assert bool(jnp.all(jnp.abs(row_sums - 1.0) < 1e-4)), row_sums

    print("KERNEL_OK")
</pallas_src>

<mosaic_0001>
module attributes {stable_mosaic.version = 11 : i64} {
  func.func @mlp_kernel(%arg0: i32, %arg1: memref<1xi32, #tpu.memory_space<smem>>, %arg2: memref<8x896xbf16, #tpu.memory_space<vmem>>, %arg3: memref<896x128xbf16, #tpu.memory_space<vmem>>, %arg4: memref<1x128xf32, #tpu.memory_space<vmem>>, %arg5: memref<128x256xbf16, #tpu.memory_space<vmem>>, %arg6: memref<1x256xf32, #tpu.memory_space<vmem>>, %arg7: memref<256x512xbf16, #tpu.memory_space<vmem>>, %arg8: memref<1x512xf32, #tpu.memory_space<vmem>>, %arg9: memref<512x128xbf16, #tpu.memory_space<vmem>>, %arg10: memref<1x128xf32, #tpu.memory_space<vmem>>, %arg11: memref<8x128xf32, #tpu.memory_space<vmem>>) attributes {dimension_semantics = [#tpu.dimension_semantics<parallel>], iteration_bounds = array<i64: 1>, scalar_prefetch = 0 : i64, scratch_operands = 0 : i64, tpu.core_type = #tpu.core_type<tc>, window_params = [{transform_indices = @transform_0, window_bounds = array<i64: 1>}, {transform_indices = @transform_1, window_bounds = array<i64: 8, 896>}, {pipeline_mode = #tpu.pipeline_mode<synchronous>, transform_indices = @transform_2, window_bounds = array<i64: 896, 128>}, {pipeline_mode = #tpu.pipeline_mode<synchronous>, transform_indices = @transform_3, window_bounds = array<i64: 1, 128>}, {pipeline_mode = #tpu.pipeline_mode<synchronous>, transform_indices = @transform_4, window_bounds = array<i64: 128, 256>}, {pipeline_mode = #tpu.pipeline_mode<synchronous>, transform_indices = @transform_5, window_bounds = array<i64: 1, 256>}, {pipeline_mode = #tpu.pipeline_mode<synchronous>, transform_indices = @transform_6, window_bounds = array<i64: 256, 512>}, {pipeline_mode = #tpu.pipeline_mode<synchronous>, transform_indices = @transform_7, window_bounds = array<i64: 1, 512>}, {pipeline_mode = #tpu.pipeline_mode<synchronous>, transform_indices = @transform_8, window_bounds = array<i64: 512, 128>}, {pipeline_mode = #tpu.pipeline_mode<synchronous>, transform_indices = @transform_9, window_bounds = array<i64: 1, 128>}, {transform_indices = @transform_10, window_bounds = array<i64: 8, 128>}]} {
    %c8_i32 = arith.constant 8 : i32
    %0 = arith.muli %arg0, %c8_i32 : i32
    %c0 = arith.constant 0 : index
    %1 = memref.load %arg1[%c0] : memref<1xi32, #tpu.memory_space<smem>>
    %c0_0 = arith.constant 0 : index
    %c0_1 = arith.constant 0 : index
    %2 = vector.load %arg2[%c0_0, %c0_1] : memref<8x896xbf16, #tpu.memory_space<vmem>>, vector<8x896xbf16>
    %c0_2 = arith.constant 0 : index
    %c0_3 = arith.constant 0 : index
    %3 = vector.load %arg3[%c0_2, %c0_3] : memref<896x128xbf16, #tpu.memory_space<vmem>>, vector<896x128xbf16>
    %cst = arith.constant dense<0.000000e+00> : vector<8x128xf32>
    %4 = tpu.matmul %2, %3, %cst {dimension_numbers = #tpu.dot_dimension_numbers<[1], [0], [0], [1], [0, 0, 1, 1], [], []>} : vector<8x896xbf16>, vector<896x128xbf16>, vector<8x128xf32> -> vector<8x128xf32>
    %c0_4 = arith.constant 0 : index
    %c0_5 = arith.constant 0 : index
    %5 = vector.load %arg4[%c0_4, %c0_5] : memref<1x128xf32, #tpu.memory_space<vmem>>, vector<1x128xf32>
    %6 = vector.broadcast %5 : vector<1x128xf32> to vector<8x128xf32>
    %7 = arith.addf %4, %6 : vector<8x128xf32>
    %cst_6 = arith.constant 0.000000e+00 : f32
    %8 = vector.broadcast %cst_6 : f32 to vector<8x128xf32>
    %9 = arith.maximumf %7, %8 : vector<8x128xf32>
    %10 = tpu.iota {dimensions = array<i32: 0>} : vector<8x128xi32>
    %11 = vector.broadcast %0 : i32 to vector<8x128xi32>
    %12 = arith.addi %10, %11 : vector<8x128xi32>
    %13 = tpu.iota {dimensions = array<i32: 1>} : vector<8x128xi32>
    %c128_i32 = arith.constant 128 : i32
    %14 = vector.broadcast %c128_i32 : i32 to vector<8x128xi32>
    %15 = arith.muli %12, %14 : vector<8x128xi32>
    %16 = arith.addi %15, %13 : vector<8x128xi32>
    %c-1640531527_i32 = arith.constant -1640531527 : i32
    %17 = arith.muli %1, %c-1640531527_i32 : i32
    %18 = vector.broadcast %17 : i32 to vector<8x128xi32>
    %19 = arith.addi %16, %18 : vector<8x128xi32>
    %c1_i32 = arith.constant 1 : i32
    %c-2048144789_i32 = arith.constant -2048144789 : i32
    %20 = arith.muli %c1_i32, %c-2048144789_i32 : i32
    %21 = vector.broadcast %20 : i32 to vector<8x128xi32>
    %22 = arith.addi %19, %21 : vector<8x128xi32>
    %c16_i32 = arith.constant 16 : i32
    %23 = vector.broadcast %c16_i32 : i32 to vector<8x128xi32>
    %24 = arith.shrui %22, %23 : vector<8x128xi32>
    %25 = arith.xori %22, %24 : vector<8x128xi32>
    %c2146121005_i32 = arith.constant 2146121005 : i32
    %26 = vector.broadcast %c2146121005_i32 : i32 to vector<8x128xi32>
    %27 = arith.muli %25, %26 : vector<8x128xi32>
    %c15_i32 = arith.constant 15 : i32
    %28 = vector.broadcast %c15_i32 : i32 to vector<8x128xi32>
    %29 = arith.shrui %27, %28 : vector<8x128xi32>
    %30 = arith.xori %27, %29 : vector<8x128xi32>
    %c-2073254261_i32 = arith.constant -2073254261 : i32
    %31 = vector.broadcast %c-2073254261_i32 : i32 to vector<8x128xi32>
    %32 = arith.muli %30, %31 : vector<8x128xi32>
    %c16_i32_7 = arith.constant 16 : i32
    %33 = vector.broadcast %c16_i32_7 : i32 to vector<8x128xi32>
    %34 = arith.shrui %32, %33 : vector<8x128xi32>
    %35 = arith.xori %32, %34 : vector<8x128xi32>
    %c8_i32_8 = arith.constant 8 : i32
    %36 = vector.broadcast %c8_i32_8 : i32 to vector<8x128xi32>
    %37 = arith.shrui %35, %36 : vector<8x128xi32>
    %c5033165_i32 = arith.constant 5033165 : i32
    %38 = vector.broadcast %c5033165_i32 : i32 to vector<8x128xi32>
    %39 = arith.cmpi uge, %37, %38 : vector<8x128xi32>
    %cst_9 = arith.constant 1.42857146 : f32
    %40 = vector.broadcast %cst_9 : f32 to vector<8x128xf32>
    %41 = arith.mulf %9, %40 : vector<8x128xf32>
    %cst_10 = arith.constant 0.000000e+00 : f32
    %42 = vector.broadcast %cst_10 : f32 to vector<8x128xf32>
    %43 = arith.select %39, %41, %42 : vector<8x128xi1>, vector<8x128xf32>
    %44 = arith.truncf %43 : vector<8x128xf32> to vector<8x128xbf16>
    %c0_11 = arith.constant 0 : index
    %c0_12 = arith.constant 0 : index
    %45 = vector.load %arg5[%c0_11, %c0_12] : memref<128x256xbf16, #tpu.memory_space<vmem>>, vector<128x256xbf16>
    %cst_13 = arith.constant dense<0.000000e+00> : vector<8x256xf32>
    %46 = tpu.matmul %44, %45, %cst_13 {dimension_numbers = #tpu.dot_dimension_numbers<[1], [0], [0], [1], [0, 0, 1, 1], [], []>} : vector<8x128xbf16>, vector<128x256xbf16>, vector<8x256xf32> -> vector<8x256xf32>
    %c0_14 = arith.constant 0 : index
    %c0_15 = arith.constant 0 : index
    %47 = vector.load %arg6[%c0_14, %c0_15] : memref<1x256xf32, #tpu.memory_space<vmem>>, vector<1x256xf32>
    %48 = vector.broadcast %47 : vector<1x256xf32> to vector<8x256xf32>
    %49 = arith.addf %46, %48 : vector<8x256xf32>
    %cst_16 = arith.constant 0.000000e+00 : f32
    %50 = vector.broadcast %cst_16 : f32 to vector<8x256xf32>
    %51 = arith.maximumf %49, %50 : vector<8x256xf32>
    %52 = tpu.iota {dimensions = array<i32: 0>} : vector<8x256xi32>
    %53 = vector.broadcast %0 : i32 to vector<8x256xi32>
    %54 = arith.addi %52, %53 : vector<8x256xi32>
    %55 = tpu.iota {dimensions = array<i32: 1>} : vector<8x256xi32>
    %c256_i32 = arith.constant 256 : i32
    %56 = vector.broadcast %c256_i32 : i32 to vector<8x256xi32>
    %57 = arith.muli %54, %56 : vector<8x256xi32>
    %58 = arith.addi %57, %55 : vector<8x256xi32>
    %c-1640531527_i32_17 = arith.constant -1640531527 : i32
    %59 = arith.muli %1, %c-1640531527_i32_17 : i32
    %60 = vector.broadcast %59 : i32 to vector<8x256xi32>
    %61 = arith.addi %58, %60 : vector<8x256xi32>
    %c2_i32 = arith.constant 2 : i32
    %c-2048144789_i32_18 = arith.constant -2048144789 : i32
    %62 = arith.muli %c2_i32, %c-2048144789_i32_18 : i32
    %63 = vector.broadcast %62 : i32 to vector<8x256xi32>
    %64 = arith.addi %61, %63 : vector<8x256xi32>
    %c16_i32_19 = arith.constant 16 : i32
    %65 = vector.broadcast %c16_i32_19 : i32 to vector<8x256xi32>
    %66 = arith.shrui %64, %65 : vector<8x256xi32>
    %67 = arith.xori %64, %66 : vector<8x256xi32>
    %c2146121005_i32_20 = arith.constant 2146121005 : i32
    %68 = vector.broadcast %c2146121005_i32_20 : i32 to vector<8x256xi32>
    %69 = arith.muli %67, %68 : vector<8x256xi32>
    %c15_i32_21 = arith.constant 15 : i32
    %70 = vector.broadcast %c15_i32_21 : i32 to vector<8x256xi32>
    %71 = arith.shrui %69, %70 : vector<8x256xi32>
    %72 = arith.xori %69, %71 : vector<8x256xi32>
    %c-2073254261_i32_22 = arith.constant -2073254261 : i32
    %73 = vector.broadcast %c-2073254261_i32_22 : i32 to vector<8x256xi32>
    %74 = arith.muli %72, %73 : vector<8x256xi32>
    %c16_i32_23 = arith.constant 16 : i32
    %75 = vector.broadcast %c16_i32_23 : i32 to vector<8x256xi32>
    %76 = arith.shrui %74, %75 : vector<8x256xi32>
    %77 = arith.xori %74, %76 : vector<8x256xi32>
    %c8_i32_24 = arith.constant 8 : i32
    %78 = vector.broadcast %c8_i32_24 : i32 to vector<8x256xi32>
    %79 = arith.shrui %77, %78 : vector<8x256xi32>
    %c5033165_i32_25 = arith.constant 5033165 : i32
    %80 = vector.broadcast %c5033165_i32_25 : i32 to vector<8x256xi32>
    %81 = arith.cmpi uge, %79, %80 : vector<8x256xi32>
    %cst_26 = arith.constant 1.42857146 : f32
    %82 = vector.broadcast %cst_26 : f32 to vector<8x256xf32>
    %83 = arith.mulf %51, %82 : vector<8x256xf32>
    %cst_27 = arith.constant 0.000000e+00 : f32
    %84 = vector.broadcast %cst_27 : f32 to vector<8x256xf32>
    %85 = arith.select %81, %83, %84 : vector<8x256xi1>, vector<8x256xf32>
    %86 = arith.truncf %85 : vector<8x256xf32> to vector<8x256xbf16>
    %c0_28 = arith.constant 0 : index
    %c0_29 = arith.constant 0 : index
    %87 = vector.load %arg7[%c0_28, %c0_29] : memref<256x512xbf16, #tpu.memory_space<vmem>>, vector<256x512xbf16>
    %cst_30 = arith.constant dense<0.000000e+00> : vector<8x512xf32>
    %88 = tpu.matmul %86, %87, %cst_30 {dimension_numbers = #tpu.dot_dimension_numbers<[1], [0], [0], [1], [0, 0, 1, 1], [], []>} : vector<8x256xbf16>, vector<256x512xbf16>, vector<8x512xf32> -> vector<8x512xf32>
    %c0_31 = arith.constant 0 : index
    %c0_32 = arith.constant 0 : index
    %89 = vector.load %arg8[%c0_31, %c0_32] : memref<1x512xf32, #tpu.memory_space<vmem>>, vector<1x512xf32>
    %90 = vector.broadcast %89 : vector<1x512xf32> to vector<8x512xf32>
    %91 = arith.addf %88, %90 : vector<8x512xf32>
    %cst_33 = arith.constant 0.000000e+00 : f32
    %92 = vector.broadcast %cst_33 : f32 to vector<8x512xf32>
    %93 = arith.maximumf %91, %92 : vector<8x512xf32>
    %94 = tpu.iota {dimensions = array<i32: 0>} : vector<8x512xi32>
    %95 = vector.broadcast %0 : i32 to vector<8x512xi32>
    %96 = arith.addi %94, %95 : vector<8x512xi32>
    %97 = tpu.iota {dimensions = array<i32: 1>} : vector<8x512xi32>
    %c512_i32 = arith.constant 512 : i32
    %98 = vector.broadcast %c512_i32 : i32 to vector<8x512xi32>
    %99 = arith.muli %96, %98 : vector<8x512xi32>
    %100 = arith.addi %99, %97 : vector<8x512xi32>
    %c-1640531527_i32_34 = arith.constant -1640531527 : i32
    %101 = arith.muli %1, %c-1640531527_i32_34 : i32
    %102 = vector.broadcast %101 : i32 to vector<8x512xi32>
    %103 = arith.addi %100, %102 : vector<8x512xi32>
    %c3_i32 = arith.constant 3 : i32
    %c-2048144789_i32_35 = arith.constant -2048144789 : i32
    %104 = arith.muli %c3_i32, %c-2048144789_i32_35 : i32
    %105 = vector.broadcast %104 : i32 to vector<8x512xi32>
    %106 = arith.addi %103, %105 : vector<8x512xi32>
    %c16_i32_36 = arith.constant 16 : i32
    %107 = vector.broadcast %c16_i32_36 : i32 to vector<8x512xi32>
    %108 = arith.shrui %106, %107 : vector<8x512xi32>
    %109 = arith.xori %106, %108 : vector<8x512xi32>
    %c2146121005_i32_37 = arith.constant 2146121005 : i32
    %110 = vector.broadcast %c2146121005_i32_37 : i32 to vector<8x512xi32>
    %111 = arith.muli %109, %110 : vector<8x512xi32>
    %c15_i32_38 = arith.constant 15 : i32
    %112 = vector.broadcast %c15_i32_38 : i32 to vector<8x512xi32>
    %113 = arith.shrui %111, %112 : vector<8x512xi32>
    %114 = arith.xori %111, %113 : vector<8x512xi32>
    %c-2073254261_i32_39 = arith.constant -2073254261 : i32
    %115 = vector.broadcast %c-2073254261_i32_39 : i32 to vector<8x512xi32>
    %116 = arith.muli %114, %115 : vector<8x512xi32>
    %c16_i32_40 = arith.constant 16 : i32
    %117 = vector.broadcast %c16_i32_40 : i32 to vector<8x512xi32>
    %118 = arith.shrui %116, %117 : vector<8x512xi32>
    %119 = arith.xori %116, %118 : vector<8x512xi32>
    %c8_i32_41 = arith.constant 8 : i32
    %120 = vector.broadcast %c8_i32_41 : i32 to vector<8x512xi32>
    %121 = arith.shrui %119, %120 : vector<8x512xi32>
    %c5033165_i32_42 = arith.constant 5033165 : i32
    %122 = vector.broadcast %c5033165_i32_42 : i32 to vector<8x512xi32>
    %123 = arith.cmpi uge, %121, %122 : vector<8x512xi32>
    %cst_43 = arith.constant 1.42857146 : f32
    %124 = vector.broadcast %cst_43 : f32 to vector<8x512xf32>
    %125 = arith.mulf %93, %124 : vector<8x512xf32>
    %cst_44 = arith.constant 0.000000e+00 : f32
    %126 = vector.broadcast %cst_44 : f32 to vector<8x512xf32>
    %127 = arith.select %123, %125, %126 : vector<8x512xi1>, vector<8x512xf32>
    %128 = arith.truncf %127 : vector<8x512xf32> to vector<8x512xbf16>
    %c0_45 = arith.constant 0 : index
    %c0_46 = arith.constant 0 : index
    %129 = vector.load %arg9[%c0_45, %c0_46] : memref<512x128xbf16, #tpu.memory_space<vmem>>, vector<512x128xbf16>
    %cst_47 = arith.constant dense<0.000000e+00> : vector<8x128xf32>
    %130 = tpu.matmul %128, %129, %cst_47 {dimension_numbers = #tpu.dot_dimension_numbers<[1], [0], [0], [1], [0, 0, 1, 1], [], []>} : vector<8x512xbf16>, vector<512x128xbf16>, vector<8x128xf32> -> vector<8x128xf32>
    %c0_48 = arith.constant 0 : index
    %c0_49 = arith.constant 0 : index
    %131 = vector.load %arg10[%c0_48, %c0_49] : memref<1x128xf32, #tpu.memory_space<vmem>>, vector<1x128xf32>
    %132 = vector.broadcast %131 : vector<1x128xf32> to vector<8x128xf32>
    %133 = arith.addf %130, %132 : vector<8x128xf32>
    %cst_50 = arith.constant dense<0xFF800000> : vector<8xf32>
    %134 = vector.multi_reduction <maximumf>, %133, %cst_50 [1] : vector<8x128xf32> to vector<8xf32>
    %135 = vector.shape_cast %134 : vector<8xf32> to vector<8x1xf32>
    %136 = vector.broadcast %135 : vector<8x1xf32> to vector<8x128xf32>
    %137 = arith.subf %133, %136 : vector<8x128xf32>
    %138 = math.exp %137 : vector<8x128xf32>
    %cst_51 = arith.constant dense<0.000000e+00> : vector<8xf32>
    %139 = vector.multi_reduction <add>, %138, %cst_51 [1] : vector<8x128xf32> to vector<8xf32>
    %140 = vector.shape_cast %139 : vector<8xf32> to vector<8x1xf32>
    %141 = vector.broadcast %140 : vector<8x1xf32> to vector<8x128xf32>
    %142 = arith.divf %138, %141 : vector<8x128xf32>
    %c0_52 = arith.constant 0 : index
    %c0_53 = arith.constant 0 : index
    %143 = vector.load %arg11[%c0_52, %c0_53] : memref<8x128xf32, #tpu.memory_space<vmem>>, vector<8x128xf32>
    tpu.vector_store %arg11[%c0_52, %c0_53], %142 {strides = array<i32>} : memref<8x128xf32, #tpu.memory_space<vmem>>, vector<8x128xf32>,
    return
  }
  func.func @transform_0(%arg0: i32) -> i32 {
    %c0_i32 = arith.constant 0 : i32
    %c0_i32_0 = arith.constant 0 : i32
    return %c0_i32 : i32
  }
  func.func @transform_1(%arg0: i32) -> (i32, i32) {
    %c0_i32 = arith.constant 0 : i32
    %c0_i32_0 = arith.constant 0 : i32
    return %arg0, %c0_i32 : i32, i32
  }
  func.func @transform_2(%arg0: i32) -> (i32, i32) {
    %c0_i32 = arith.constant 0 : i32
    %c0_i32_0 = arith.constant 0 : i32
    %c0_i32_1 = arith.constant 0 : i32
    return %c0_i32, %c0_i32_0 : i32, i32
  }
  func.func @transform_3(%arg0: i32) -> (i32, i32) {
    %c0_i32 = arith.constant 0 : i32
    %c0_i32_0 = arith.constant 0 : i32
    %c0_i32_1 = arith.constant 0 : i32
    return %c0_i32, %c0_i32_0 : i32, i32
  }
  func.func @transform_4(%arg0: i32) -> (i32, i32) {
    %c0_i32 = arith.constant 0 : i32
    %c0_i32_0 = arith.constant 0 : i32
    %c0_i32_1 = arith.constant 0 : i32
    return %c0_i32, %c0_i32_0 : i32, i32
  }
  func.func @transform_5(%arg0: i32) -> (i32, i32) {
    %c0_i32 = arith.constant 0 : i32
    %c0_i32_0 = arith.constant 0 : i32
    %c0_i32_1 = arith.constant 0 : i32
    return %c0_i32, %c0_i32_0 : i32, i32
  }
  func.func @transform_6(%arg0: i32) -> (i32, i32) {
    %c0_i32 = arith.constant 0 : i32
    %c0_i32_0 = arith.constant 0 : i32
    %c0_i32_1 = arith.constant 0 : i32
    return %c0_i32, %c0_i32_0 : i32, i32
  }
  func.func @transform_7(%arg0: i32) -> (i32, i32) {
    %c0_i32 = arith.constant 0 : i32
    %c0_i32_0 = arith.constant 0 : i32
    %c0_i32_1 = arith.constant 0 : i32
    return %c0_i32, %c0_i32_0 : i32, i32
  }
  func.func @transform_8(%arg0: i32) -> (i32, i32) {
    %c0_i32 = arith.constant 0 : i32
    %c0_i32_0 = arith.constant 0 : i32
    %c0_i32_1 = arith.constant 0 : i32
    return %c0_i32, %c0_i32_0 : i32, i32
  }
  func.func @transform_9(%arg0: i32) -> (i32, i32) {
    %c0_i32 = arith.constant 0 : i32
    %c0_i32_0 = arith.constant 0 : i32
    %c0_i32_1 = arith.constant 0 : i32
    return %c0_i32, %c0_i32_0 : i32, i32
  }
  func.func @transform_10(%arg0: i32) -> (i32, i32) {
    %c0_i32 = arith.constant 0 : i32
    %c0_i32_0 = arith.constant 0 : i32
    return %arg0, %c0_i32 : i32, i32
  }
}

</mosaic_0001>

<bundles_post_ra>
// kernel: mymodel_forward.1
= control target key start
LH: loop header
LB: loop body
LE: loop exit
PB: predicated region body
PF: predicated region fallthrough
CT: control target
= control target key end

     0   :  { %v2411_v42 = vmov 0.0   ;;  %vm2412_vm0 = vmmov 0   ;;  %s3072_s0 = inlined_call_operand.<no memory space> [shape: s32[1], index: 0, kind: input, shape index: {}]   ;;  %s3073_s1 = inlined_call_operand.vmem [shape: bf16[8,896], index: 1, kind: input, shape index: {}]   ;;  %s3074_s2 = inlined_call_operand.vmem [shape: bf16[896,128], index: 2, kind: input, shape index: {}]   ;;  %s3075_s3 = inlined_call_operand.vmem [shape: f32[1,128], index: 3, kind: input, shape index: {}]   ;;  %s3076_s4 = inlined_call_operand.vmem [shape: bf16[128,256], index: 4, kind: input, shape index: {}]   ;;  %s3077_s5 = inlined_call_operand.vmem [shape: f32[1,256], index: 5, kind: input, shape index: {}]   ;;  %s3078_s6 = inlined_call_operand.vmem [shape: bf16[256,512], index: 6, kind: input, shape index: {}]   ;;  %s3079_s7 = inlined_call_operand.vmem [shape: f32[1,512], index: 7, kind: input, shape index: {}]   ;;  %s3080_s8 = inlined_call_operand.vmem [shape: bf16[512,128], index: 8, kind: input, shape index: {}]   ;;  %s3081_s9 = inlined_call_operand.vmem [shape: f32[1,128], index: 9, kind: input, shape index: {}]   ;;  %s3082_s10 = inlined_call_operand.hbm [shape: f32[8,128], index: 10, kind: output, shape index: {}]  }
   0x1   :  { %v2168_v0 = vld [vmem:[%s3074_s2 + $0x40] sm:$0xff]   ;;  %v2172_v4 = vld [vmem:[%s3074_s2 + $0x48] sm:$0xff]   ;;  %v2176_v8 = vld [vmem:[%s3074_s2 + $0x50] sm:$0xff]  }
   0x2   :  { %v2169_v1 = vld [vmem:[%s3074_s2] sm:$0xff]   ;;  %2025 = vmatprep.subr.bf16.mxu0 %v2168_v0  ;;  %v2173_v5 = vld [vmem:[%s3074_s2 + $0x8] sm:$0xff]   ;;  %v2177_v9 = vld [vmem:[%s3074_s2 + $0x10] sm:$0xff]  }
   0x3   :  { %v2170_v2 = vld [vmem:[%s3074_s2 + $0xc0] sm:$0xff]   ;;  %2026 = vmatpush3.bf16.msra.mxu0 %v2169_v1  ;;  %v2174_v6 = vld [vmem:[%s3074_s2 + $0xc8] sm:$0xff]   ;;  %v2178_v10 = vld [vmem:[%s3074_s2 + $0xd0] sm:$0xff]  }
   0x4   :  { %v2171_v3 = vld [vmem:[%s3074_s2 + $0x80] sm:$0xff]   ;;  %2047 = vmatprep.subr.bf16.mxu1 %v2170_v2  ;;  %2027 = vmatprep.subr.bf16.mxu0 %v2172_v4  ;;  %v2175_v7 = vld [vmem:[%s3074_s2 + $0x88] sm:$0xff]   ;;  %v2179_v11 = vld [vmem:[%s3074_s2 + $0x90] sm:$0xff]  }
   0x5   :  { %2048 = vmatpush3.bf16.msra.mxu1 %v2171_v3  ;;  %v2180_v12 = vld [vmem:[%s3074_s2 + $0x58] sm:$0xff]   ;;  %v2184_v16 = vld [vmem:[%s3074_s2 + $0x60] sm:$0xff]   ;;  %v2188_v20 = vld [vmem:[%s3074_s2 + $0x68] sm:$0xff]  }
   0x6   :  { %2049 = vmatprep.subr.bf16.mxu1 %v2174_v6  ;;  %v2181_v13 = vld [vmem:[%s3074_s2 + $0x18] sm:$0xff]   ;;  %v2185_v17 = vld [vmem:[%s3074_s2 + $0x20] sm:$0xff]   ;;  %v2189_v21 = vld [vmem:[%s3074_s2 + $0x28] sm:$0xff]  }
   0x7   :  { %2028 = vmatpush3.bf16.msra.mxu0 %v2173_v5  ;;  %v2182_v14 = vld [vmem:[%s3074_s2 + $0xd8] sm:$0xff]   ;;  %v2186_v18 = vld [vmem:[%s3074_s2 + $0xe0] sm:$0xff]   ;;  %v2190_v22 = vld [vmem:[%s3074_s2 + $0xe8] sm:$0xff]  }
   0x8   :  { %2029 = vmatprep.subr.bf16.mxu0 %v2176_v8  ;;  %v2183_v15 = vld [vmem:[%s3074_s2 + $0x98] sm:$0xff]   ;;  %v2187_v19 = vld [vmem:[%s3074_s2 + $0xa0] sm:$0xff]   ;;  %v2191_v23 = vld [vmem:[%s3074_s2 + $0xa8] sm:$0xff]  }
   0x9   :  { %2050 = vmatpush3.bf16.msra.mxu1 %v2175_v7  ;;  %v2192_v24 = vld [vmem:[%s3074_s2 + $0x70] sm:$0xff]   ;;  %v2196_v28 = vld [vmem:[%s3074_s2 + $0x78] sm:$0xff]   ;;  %v40_v31 = vld [vmem:[%s3073_s1] sm:$0xff] }
   0xa   :  { %2051 = vmatprep.subr.bf16.mxu1 %v2178_v10  ;;  %v2193_v25 = vld [vmem:[%s3074_s2 + $0x30] sm:$0xff]   ;;  %v2197_v29 = vld [vmem:[%s3074_s2 + $0x38] sm:$0xff]   ;;  %v1822_v32 = vcombine.low %v40_v31, %v40_v31  ;;  %v1823_v33 = vcombine.high %v40_v31, %v40_v31  ;;  %v2202_v35 = vld [vmem:[%s3074_s2 + $0x140] sm:$0xff]  }
   0xb   :  { %2030 = vmatpush3.bf16.msra.mxu0 %v2177_v9  ;;  %v2194_v26 = vld [vmem:[%s3074_s2 + $0xf0] sm:$0xff]   ;;  %v2198_v30 = vld [vmem:[%s3074_s2 + $0xf8] sm:$0xff]   ;;  %v41_v36 = vld [vmem:[%s3073_s1 + $0x8] sm:$0xff] }
   0xc   :  { %2031 = vmatprep.subr.bf16.mxu0 %v2180_v12  ;;  %v2195_v27 = vld [vmem:[%s3074_s2 + $0xb0] sm:$0xff]   ;;  %v2201_v34 = vld [vmem:[%s3074_s2 + $0xb8] sm:$0xff]   ;;  %556 = vmatprep.mubr.bf16.mxu0 %v1823_v33  ;;  %v1824_v37 = vcombine.low %v41_v36, %v41_v36  ;;  %v1825_v38 = vcombine.high %v41_v36, %v41_v36  ;;  %v2205_v39 = vld [vmem:[%s3074_s2 + $0x100] sm:$0xff]  }
   0xd   :  { %2052 = vmatpush3.bf16.msra.mxu1 %v2179_v11  ;;  %v2206_v40 = vld [vmem:[%s3074_s2 + $0x180] sm:$0xff]   ;;  %v2207_v41 = vld [vmem:[%s3074_s2 + $0x148] sm:$0xff]   ;;  %v2210_v45 = vld [vmem:[%s3074_s2 + $0x150] sm:$0xff]  }
   0xe   :  { %2053 = vmatprep.subr.bf16.mxu1 %v2182_v14  ;;  %596 = vmatprep.mubr.bf16.mxu1 %v1825_v38  ;;  %v2208_v43 = vld [vmem:[%s3074_s2 + $0x108] sm:$0xff]   ;;  %v2211_v46 = vld [vmem:[%s3074_s2 + $0x110] sm:$0xff]   ;;  %v2213_v48 = vld [vmem:[%s3074_s2 + $0x158] sm:$0xff]  }
   0xf   :  { %2032 = vmatpush3.bf16.msra.mxu0 %v2181_v13  ;;  %v2209_v44 = vld [vmem:[%s3074_s2 + $0x188] sm:$0xff]   ;;  %v2212_v47 = vld [vmem:[%s3074_s2 + $0x190] sm:$0xff]   ;;  %v2214_v49 = vld [vmem:[%s3074_s2 + $0x118] sm:$0xff]  }
  0x10   :  { %2033 = vmatprep.subr.bf16.mxu0 %v2184_v16  ;;  %v2216_v50 = vld [vmem:[%s3074_s2 + $0x160] sm:$0xff]   ;;  %v2215_v51 = vld [vmem:[%s3074_s2 + $0x198] sm:$0xff]   ;;  %v2219_v53 = vld [vmem:[%s3074_s2 + $0x168] sm:$0xff]  }
  0x11   :  { %2054 = vmatpush3.bf16.msra.mxu1 %v2183_v15  ;;  %v2217_v52 = vld [vmem:[%s3074_s2 + $0x120] sm:$0xff]   ;;  %v2220_v55 = vld [vmem:[%s3074_s2 + $0x128] sm:$0xff]   ;;  %v2222_v56 = vld [vmem:[%s3074_s2 + $0x170] sm:$0xff]  }
  0x12   :  { %2055 = vmatprep.subr.bf16.mxu1 %v2186_v18  ;;  %v2218_v54 = vld [vmem:[%s3074_s2 + $0x1a0] sm:$0xff]   ;;  %v2221_v57 = vld [vmem:[%s3074_s2 + $0x1a8] sm:$0xff]   ;;  %v2223_v58 = vld [vmem:[%s3074_s2 + $0x130] sm:$0xff]  }
  0x13   :  { %2034 = vmatpush3.bf16.msra.mxu0 %v2185_v17  ;;  %v42_v59 = vld [vmem:[%s3073_s1 + $0x10] sm:$0xff]  ;;  %v2225_v62 = vld [vmem:[%s3074_s2 + $0x178] sm:$0xff]  }
  0x14   :  { %2035 = vmatprep.subr.bf16.mxu0 %v2188_v20  ;;  %v2224_v60 = vld [vmem:[%s3074_s2 + $0x1b0] sm:$0xff]   ;;  %v1827_v61 = vcombine.high %v42_v59, %v42_v59  ;;  %v2226_v63 = vld [vmem:[%s3074_s2 + $0x138] sm:$0xff]   ;;  %v1826_v1 = vcombine.low %v42_v59, %v42_v59 }
  0x15   :  { %2056 = vmatpush3.bf16.msra.mxu1 %v2187_v19  ;;  %v2229_v0 = vld [vmem:[%s3074_s2 + $0x1b8] sm:$0xff]  }
  0x16   :  { %2057 = vmatprep.subr.bf16.mxu1 %v2190_v22  ;;  %v2230_v2 = vld [vmem:[%s3073_s1 + $0x18] ss:$0 sps:$4 sm:$0xff]  }
  0x17   :  { %2036 = vmatpush3.bf16.msra.mxu0 %v2189_v21 }
  0x18   :  { %2037 = vmatprep.subr.bf16.mxu0 %v2192_v24 }
  0x19   :  { %2058 = vmatpush3.bf16.msra.mxu1 %v2191_v23 }
  0x1a   :  { %2059 = vmatprep.subr.bf16.mxu1 %v2194_v26 }
  0x1b   :  { %2038 = vmatpush3.bf16.msra.mxu0 %v2193_v25 }
  0x1c   :  { %2039 = vmatprep.subr.bf16.mxu0 %v2196_v28 }
  0x1d   :  { %2060 = vmatpush3.bf16.msra.mxu1 %v2195_v27 }
  0x1e   :  { %2061 = vmatprep.subr.bf16.mxu1 %v2198_v30 }
  0x1f   :  { %2040 = vmatpush3.bf16.msra.mxu0 %v2197_v29 }
  0x20   :  { %2069 = vmatprep.subr.bf16.mxu0 %v2202_v35 }
  0x21   :  { %2062 = vmatpush3.bf16.msra.mxu1 %v2201_v34 }
  0x22   :  { %557 = vmatmul.mubr.bf16.vlgmr.msra.gmra.mrb[0].mxu0 %v1822_v32  ;;  %2144 = vmatprep.subr.bf16.mxu1 %v2411_v42 }
  0x23   :  { %2070 = vmatpush3.bf16.msra.mxu0 %v2205_v39  ;;  %636 = vmatprep.mubr.bf16.mxu0 %v1827_v61 }
  0x24   :  { %597 = vmatmul.mubr.bf16.vlgmr.msra.gmra.mrb[0].mxu1 %v1824_v37  ;;  %2071 = vmatprep.subr.bf16.mxu0 %v2207_v41 }
  0x25   :  { %2145 = vmatpush3.bf16.msra.mxu1 %v2206_v40  ;;  %2160 = vmatprep.mubr.msk.bf16.mxu1 %vm2412_vm0, %v2411_v42 }
  0x26   :  { %2146 = vmatprep.subr.bf16.mxu1 %v2411_v42 }
  0x27   :  { %2072 = vmatpush3.bf16.msra.mxu0 %v2208_v43 }
  0x28   :  { %2073 = vmatprep.subr.bf16.mxu0 %v2210_v45 }
  0x29   :  { %2147 = vmatpush3.bf16.msra.mxu1 %v2209_v44 }
  0x2a   :  { %2148 = vmatprep.subr.bf16.mxu1 %v2411_v42 }
  0x2b   :  { %2074 = vmatpush3.bf16.msra.mxu0 %v2211_v46 }
  0x2c   :  { %2075 = vmatprep.subr.bf16.mxu0 %v2213_v48 }
  0x2d   :  { %2149 = vmatpush3.bf16.msra.mxu1 %v2212_v47 }
  0x2e   :  { %2150 = vmatprep.subr.bf16.mxu1 %v2411_v42 }
  0x2f   :  { %2076 = vmatpush3.bf16.msra.mxu0 %v2214_v49 }
  0x30   :  { %2077 = vmatprep.subr.bf16.mxu0 %v2216_v50 }
  0x31   :  { %2151 = vmatpush3.bf16.msra.mxu1 %v2215_v51 }
  0x32   :  { %2152 = vmatprep.subr.bf16.mxu1 %v2411_v42 }
  0x33   :  { %2078 = vmatpush3.bf16.msra.mxu0 %v2217_v52 }
  0x34   :  { %2079 = vmatprep.subr.bf16.mxu0 %v2219_v53 }
  0x35   :  { %2153 = vmatpush3.bf16.msra.mxu1 %v2218_v54 }
  0x36   :  { %2154 = vmatprep.subr.bf16.mxu1 %v2411_v42 }
  0x37   :  { %2080 = vmatpush3.bf16.msra.mxu0 %v2220_v55 }
  0x38   :  { %2081 = vmatprep.subr.bf16.mxu0 %v2222_v56 }
  0x39   :  { %2155 = vmatpush3.bf16.msra.mxu1 %v2221_v57 }
  0x3a   :  { %2156 = vmatprep.subr.bf16.mxu1 %v2411_v42 }
  0x3b   :  { %2082 = vmatpush3.bf16.msra.mxu0 %v2223_v58 }
  0x3c   :  { %2083 = vmatprep.subr.bf16.mxu0 %v2225_v62 }
  0x3d   :  { %2157 = vmatpush3.bf16.msra.mxu1 %v2224_v60 }
  0x3e   :  { %2158 = vmatprep.subr.bf16.mxu1 %v2411_v42 }
  0x3f   :  { %2084 = vmatpush3.bf16.msra.mxu0 %v2226_v63 }
  0x41   :  { %2159 = vmatpush3.bf16.msra.mxu1 %v2229_v0 }
  0x42   :  { %637 = vmatmul.mubr.bf16.vlgmr.msra.gmra.mrb[4].mxu0 %v1826_v1 }
  0x44   :  { %2161 = vmatmul.mubr.bf16.vlgmr.msra.gmra.mrb[4].mxu1 %v2230_v2 }
  0x45   :  { %16 = vsyncpa [#allocation4], 0  ;;  %v2231_v3 = vld [vmem:[%s3076_s4] ss:$8 sps:$4 sm:$0xff]   ;;  %v2233_v4 = vld [vmem:[%s3076_s4 + $0x4] ss:$8 sps:$4 sm:$0xff]   ;;  %v685_v49 = vlaneseq }
  0x46   :  { %v2236_v5 = vld [vmem:[%s3076_s4 + $0x14] ss:$8 sps:$4 sm:$0xff]   ;;  %818 = vmatprep.subr.bf16.mxu0 %v2233_v4  ;;  %v2234_v6 = vld [vmem:[%s3076_s4 + $0x10] ss:$8 sps:$4 sm:$0xff]   ;;  %v2239_v7 = vld [vmem:[%s3076_s4 + $0x24] ss:$8 sps:$4 sm:$0xff]  }
  0x47   :  { %819 = vmatpush1.bf16.msra.mxu0 %v2231_v3  ;;  %v2237_v8 = vld [vmem:[%s3076_s4 + $0x20] ss:$8 sps:$4 sm:$0xff]   ;;  %v2242_v9 = vld [vmem:[%s3076_s4 + $0x34] ss:$8 sps:$4 sm:$0xff]   ;;  %v2240_v10 = vld [vmem:[%s3076_s4 + $0x30] ss:$8 sps:$4 sm:$0xff]  }
  0x48   :  { %820 = vmatprep.subr.bf16.mxu0 %v2236_v5  ;;  %v2245_v11 = vld [vmem:[%s3076_s4 + $0x44] ss:$8 sps:$4 sm:$0xff]   ;;  %v2243_v12 = vld [vmem:[%s3076_s4 + $0x40] ss:$8 sps:$4 sm:$0xff]   ;;  %v2248_v13 = vld [vmem:[%s3076_s4 + $0x54] ss:$8 sps:$4 sm:$0xff]  }
  0x49   :  { %v2246_v14 = vld [vmem:[%s3076_s4 + $0x50] ss:$8 sps:$4 sm:$0xff]   ;;  %v2251_v15 = vld [vmem:[%s3076_s4 + $0x64] ss:$8 sps:$4 sm:$0xff]   ;;  %v2249_v16 = vld [vmem:[%s3076_s4 + $0x60] ss:$8 sps:$4 sm:$0xff]  }
  0x4a   :  { %v2254_v17 = vld [vmem:[%s3076_s4 + $0x74] ss:$8 sps:$4 sm:$0xff]   ;;  %v2252_v18 = vld [vmem:[%s3076_s4 + $0x70] ss:$8 sps:$4 sm:$0xff]   ;;  %v2413_v19 = vmov 0   ;;  %v2785_v50 = vshrl.u32 %v685_v49, 7 }
  0x4b   :  { %821 = vmatpush1.bf16.msra.mxu0 %v2234_v6  ;;  %850 = vmatprep.mubr.bf16.mxu0 %v2413_v19  ;;  %v2255_v20 = vld [vmem:[%s3078_s6] ss:$16 sps:$4 sm:$0xff]   ;;  %v2257_v21 = vld [vmem:[%s3078_s6 + $0x4] ss:$16 sps:$4 sm:$0xff]   ;;  %v2260_v22 = vld [vmem:[%s3078_s6 + $0xc] ss:$16 sps:$4 sm:$0xff]  }
  0x4c   :  { %822 = vmatprep.subr.bf16.mxu0 %v2239_v7  ;;  %v2263_v23 = vld [vmem:[%s3078_s6 + $0x24] ss:$16 sps:$4 sm:$0xff]   ;;  %1301 = vmatprep.subr.bf16.mxu1 %v2257_v21  ;;  %v2261_v24 = vld [vmem:[%s3078_s6 + $0x20] ss:$16 sps:$4 sm:$0xff]   ;;  %v2787_v51 = vand.u32 127, %v685_v49  ;;  %v691_v52 = vmul.u32 128, %v2785_v50 }
  0x4d   :  { %1302 = vmatpush1.bf16.msra.mxu1 %v2255_v20  ;;  %v2269_v25 = vld [vmem:[%s3078_s6 + $0x44] ss:$16 sps:$4 sm:$0xff]   ;;  %v2267_v26 = vld [vmem:[%s3078_s6 + $0x40] ss:$16 sps:$4 sm:$0xff]   ;;  %s693_s14 = smul.u32 2654435769, %s3072_s0 }
  0x4e   :  { %1303 = vmatprep.subr.bf16.mxu1 %v2263_v23  ;;  %v2275_v27 = vld [vmem:[%s3078_s6 + $0x64] ss:$16 sps:$4 sm:$0xff]   ;;  %v2273_v28 = vld [vmem:[%s3078_s6 + $0x60] ss:$16 sps:$4 sm:$0xff]   ;;  %v692_v53 = vadd.s32 %v691_v52, %v2787_v51  ;;  %v2318_v49 = vld [vmem:[%s3078_s6 + $0x148] ss:$16 sps:$4 sm:$0xff]  }
  0x4f   :  { %823 = vmatpush1.bf16.msra.mxu0 %v2237_v8  ;;  %v2281_v29 = vld [vmem:[%s3078_s6 + $0x84] ss:$16 sps:$4 sm:$0xff]   ;;  %v2279_v30 = vld [vmem:[%s3078_s6 + $0x80] ss:$16 sps:$4 sm:$0xff]   ;;  %v2794_v54 = vstv %s693_s14  ;;  %v2326_v52 = vld [vmem:[%s3078_s6 + $0x16c] ss:$16 sps:$4 sm:$0xff]  }
  0x50   :  { %824 = vmatprep.subr.bf16.mxu0 %v2242_v9  ;;  %v2287_v31 = vld [vmem:[%s3078_s6 + $0xa4] ss:$16 sps:$4 sm:$0xff]   ;;  %v2285_v32 = vld [vmem:[%s3078_s6 + $0xa0] ss:$16 sps:$4 sm:$0xff]   ;;  %v695_v55 = vadd.s32 %v2794_v54, %v692_v53  ;;  %v2324_v53 = vld [vmem:[%s3078_s6 + $0x168] ss:$16 sps:$4 sm:$0xff]  }
  0x51   :  { %1304 = vmatpush1.bf16.msra.mxu1 %v2261_v24  ;;  %v2293_v33 = vld [vmem:[%s3078_s6 + $0xc4] ss:$16 sps:$4 sm:$0xff]   ;;  %v2291_v34 = vld [vmem:[%s3078_s6 + $0xc0] ss:$16 sps:$4 sm:$0xff]  }
  0x52   :  { %1305 = vmatprep.subr.bf16.mxu1 %v2269_v25  ;;  %v2299_v35 = vld [vmem:[%s3078_s6 + $0xe4] ss:$16 sps:$4 sm:$0xff]   ;;  %v2297_v36 = vld [vmem:[%s3078_s6 + $0xe0] ss:$16 sps:$4 sm:$0xff]   ;;  %v696_v57 = vadd.s32 2246822507, %v695_v55 }
  0x53   :  { %825 = vmatpush1.bf16.msra.mxu0 %v2240_v10  ;;  %v2305_v37 = vld [vmem:[%s3078_s6 + $0x104] ss:$16 sps:$4 sm:$0xff]   ;;  %v2303_v38 = vld [vmem:[%s3078_s6 + $0x100] ss:$16 sps:$4 sm:$0xff]   ;;  %v2332_v55 = vld [vmem:[%s3078_s6 + $0x18c] ss:$16 sps:$4 sm:$0xff]  }
  0x54   :  { %826 = vmatprep.subr.bf16.mxu0 %v2245_v11  ;;  %v2311_v39 = vld [vmem:[%s3078_s6 + $0x124] ss:$16 sps:$4 sm:$0xff]   ;;  %v2309_v40 = vld [vmem:[%s3078_s6 + $0x120] ss:$16 sps:$4 sm:$0xff]   ;;  %v697_v4 = vshrl.u32 %v696_v57, 16 }
  0x55   :  { %1306 = vmatpush1.bf16.msra.mxu1 %v2267_v26  ;;  %v2317_v41 = vld [vmem:[%s3078_s6 + $0x144] ss:$16 sps:$4 sm:$0xff]   ;;  %v2315_v42 = vld [vmem:[%s3078_s6 + $0x140] ss:$16 sps:$4 sm:$0xff]  }
  0x56   :  { %1307 = vmatprep.subr.bf16.mxu1 %v2275_v27  ;;  %v2323_v43 = vld [vmem:[%s3078_s6 + $0x164] ss:$16 sps:$4 sm:$0xff]   ;;  %v2321_v44 = vld [vmem:[%s3078_s6 + $0x160] ss:$16 sps:$4 sm:$0xff]   ;;  %v698_v7 = vxor.u32 %v697_v4, %v696_v57  ;;  %v2338_v57 = vld [vmem:[%s3078_s6 + $0x1ac] ss:$16 sps:$4 sm:$0xff]  }
  0x57   :  { %827 = vmatpush1.bf16.msra.mxu0 %v2243_v12  ;;  %v2329_v45 = vld [vmem:[%s3078_s6 + $0x184] ss:$16 sps:$4 sm:$0xff]   ;;  %v2327_v46 = vld [vmem:[%s3078_s6 + $0x180] ss:$16 sps:$4 sm:$0xff]  }
  0x58   :  { %828 = vmatprep.subr.bf16.mxu0 %v2248_v13  ;;  %v2335_v47 = vld [vmem:[%s3078_s6 + $0x1a4] ss:$16 sps:$4 sm:$0xff]   ;;  %v2333_v48 = vld [vmem:[%s3078_s6 + $0x1a0] ss:$16 sps:$4 sm:$0xff]   ;;  %v699_v8 = vmul.u32 2146121005, %v698_v7 }
  0x59   :  { %1308 = vmatpush1.bf16.msra.mxu1 %v2273_v28  ;;  %v1821_v58 = vld [vmem:[%s3075_s3] ss:$0 sm:$0xff]  ;;  %v2258_v28 = vld [vmem:[%s3078_s6 + $0x8] ss:$16 sps:$4 sm:$0xff]  }
  0x5a   :  { %1309 = vmatprep.subr.bf16.mxu1 %v2281_v29  ;;  %v700_v9 = vshrl.u32 %v699_v8, 15  ;;  %v2352_v4 = vld [vmem:[%s3080_s8 + $0xc0] sm:$0xff]  }
  0x5b   :  { %829 = vmatpush1.bf16.msra.mxu0 %v2246_v14 }
  0x5c   :  { %830 = vmatprep.subr.bf16.mxu0 %v2251_v15  ;;  %v701_v10 = vxor.u32 %v700_v9, %v699_v8 }
  0x5d   :  { %1310 = vmatpush1.bf16.msra.mxu1 %v2279_v30  ;;  %v2266_v30 = vld [vmem:[%s3078_s6 + $0x2c] ss:$16 sps:$4 sm:$0xff]  }
  0x5e   :  { %1311 = vmatprep.subr.bf16.mxu1 %v2287_v31  ;;  %v702_v11 = vmul.u32 2221713035, %v701_v10  ;;  %v2264_v31 = vld [vmem:[%s3078_s6 + $0x28] ss:$16 sps:$4 sm:$0xff]  }
  0x5f   :  { %831 = vmatpush1.bf16.msra.mxu0 %v2249_v16 }
  0x60   :  { %832 = vmatprep.subr.bf16.mxu0 %v2254_v17  ;;  %v703_v12 = vshrl.u32 %v702_v11, 16 }
  0x61   :  { %1312 = vmatpush1.bf16.msra.mxu1 %v2285_v32  ;;  %v2272_v32 = vld [vmem:[%s3078_s6 + $0x4c] ss:$16 sps:$4 sm:$0xff]  }
  0x62   :  { %1313 = vmatprep.subr.bf16.mxu1 %v2293_v33  ;;  %v704_v14 = vxor.u32 %v703_v12, %v702_v11  ;;  %v2270_v33 = vld [vmem:[%s3078_s6 + $0x48] ss:$16 sps:$4 sm:$0xff]  }
  0x63   :  { %833 = vmatpush1.bf16.msra.mxu0 %v2252_v18 }
  0x64   :  { %1342 = vmatprep.subr.bf16.mxu0 %v2260_v22  ;;  %v705_v23 = vshrl.u32 %v704_v14, 8 }
  0x65   :  { %1314 = vmatpush1.bf16.msra.mxu1 %v2291_v34  ;;  %v2278_v34 = vld [vmem:[%s3078_s6 + $0x6c] ss:$16 sps:$4 sm:$0xff]  }
  0x66   :  { %1315 = vmatprep.subr.bf16.mxu1 %v2299_v35  ;;  %vm706_vm1 = vcmp.ge.u32.totalorder %v705_v23, 5033165  ;;  %v2276_v35 = vld [vmem:[%s3078_s6 + $0x68] ss:$16 sps:$4 sm:$0xff]  }
  0x67   :  { %vm1901_vm2 = vmpackc.low %vm706_vm1, %vm706_vm1 }
  0x69   :  { %1316 = vmatpush1.bf16.msra.mxu1 %v2297_v36  ;;  %v2284_v36 = vld [vmem:[%s3078_s6 + $0x8c] ss:$16 sps:$4 sm:$0xff]  }
  0x6a   :  { %1317 = vmatprep.subr.bf16.mxu1 %v2305_v37  ;;  %v2282_v37 = vld [vmem:[%s3078_s6 + $0x88] ss:$16 sps:$4 sm:$0xff]  }
  0x6d   :  { %1318 = vmatpush1.bf16.msra.mxu1 %v2303_v38  ;;  %v2290_v38 = vld [vmem:[%s3078_s6 + $0xac] ss:$16 sps:$4 sm:$0xff]  }
  0x6e   :  { %1319 = vmatprep.subr.bf16.mxu1 %v2311_v39  ;;  %v2288_v39 = vld [vmem:[%s3078_s6 + $0xa8] ss:$16 sps:$4 sm:$0xff]  }
  0x71   :  { %1320 = vmatpush1.bf16.msra.mxu1 %v2309_v40  ;;  %v2296_v40 = vld [vmem:[%s3078_s6 + $0xcc] ss:$16 sps:$4 sm:$0xff]  }
  0x72   :  { %1321 = vmatprep.subr.bf16.mxu1 %v2317_v41  ;;  %v2294_v41 = vld [vmem:[%s3078_s6 + $0xc8] ss:$16 sps:$4 sm:$0xff]  }
  0x75   :  { %1322 = vmatpush1.bf16.msra.mxu1 %v2315_v42  ;;  %v2302_v42 = vld [vmem:[%s3078_s6 + $0xec] ss:$16 sps:$4 sm:$0xff]  }
  0x76   :  { %1323 = vmatprep.subr.bf16.mxu1 %v2323_v43  ;;  %v2300_v43 = vld [vmem:[%s3078_s6 + $0xe8] ss:$16 sps:$4 sm:$0xff]  }
  0x79   :  { %1324 = vmatpush1.bf16.msra.mxu1 %v2321_v44  ;;  %v2308_v44 = vld [vmem:[%s3078_s6 + $0x10c] ss:$16 sps:$4 sm:$0xff]  }
  0x7a   :  { %1325 = vmatprep.subr.bf16.mxu1 %v2329_v45  ;;  %v2306_v45 = vld [vmem:[%s3078_s6 + $0x108] ss:$16 sps:$4 sm:$0xff]  }
  0x7d   :  { %1326 = vmatpush1.bf16.msra.mxu1 %v2327_v46  ;;  %v2314_v46 = vld [vmem:[%s3078_s6 + $0x12c] ss:$16 sps:$4 sm:$0xff]  }
  0x7e   :  { %1327 = vmatprep.subr.bf16.mxu1 %v2335_v47  ;;  %v2312_v47 = vld [vmem:[%s3078_s6 + $0x128] ss:$16 sps:$4 sm:$0xff]  }
  0x81   :  { %1328 = vmatpush1.bf16.msra.mxu1 %v2333_v48  ;;  %v2320_v48 = vld [vmem:[%s3078_s6 + $0x14c] ss:$16 sps:$4 sm:$0xff]  }
  0xf5   :  { %v2041_v56 = vpop.f32.mrb[0].mxu0 }
  0xf6   :  { %v2042_v59 = vpop.f32.mrb[1].mxu0 }
  0xf7   :  { %v2043_v60 = vadd.f32 %v2042_v59, %v2041_v56  ;;  %v2044_v61 = vpop.f32.mrb[2].mxu0  ;;  %v2063_v62 = vpop.f32.mrb[0].mxu1  ;;  %v2330_v56 = vld [vmem:[%s3078_s6 + $0x188] ss:$16 sps:$4 sm:$0xff]   ;;  %v2341_v59 = vld [vmem:[%s3078_s6 + $0x1c4] ss:$16 sps:$4 sm:$0xff]  }
  0xf8   :  { %v2045_v63 = vpop.f32.mrb[3].mxu0  ;;  %v2064_v0 = vpop.f32.mrb[1].mxu1  ;;  %v2339_v61 = vld [vmem:[%s3078_s6 + $0x1c0] ss:$16 sps:$4 sm:$0xff]   ;;  %1329 = vmatprep.subr.bf16.mxu1 %v2341_v59 }
  0xf9   :  { %v559_v1 = vadd.f32 %v2043_v60, %v1821_v58  ;;  %v2065_v2 = vadd.f32 %v2064_v0, %v2063_v62  ;;  %v2066_v3 = vpop.f32.mrb[2].mxu1  ;;  %v2336_v58 = vld [vmem:[%s3078_s6 + $0x1a8] ss:$16 sps:$4 sm:$0xff]   ;;  %v2344_v60 = vld [vmem:[%s3078_s6 + $0x1cc] ss:$16 sps:$4 sm:$0xff]   ;;  %1330 = vmatpush1.bf16.msra.mxu1 %v2339_v61  ;;  %v2361_v59 = vld [vmem:[%s3080_s8 + $0x10] sm:$0xff]  }
  0xfa   :  { %v2067_v5 = vpop.f32.mrb[3].mxu1  ;;  %v2342_v62 = vld [vmem:[%s3078_s6 + $0x1c8] ss:$16 sps:$4 sm:$0xff]   ;;  %v2347_v63 = vld [vmem:[%s3078_s6 + $0x1e4] ss:$16 sps:$4 sm:$0xff]  }
  0xfb   :  { %v599_v6 = vadd.f32 %v2065_v2, %v559_v1  ;;  %v2350_v0 = vld [vmem:[%s3078_s6 + $0x1ec] ss:$16 sps:$4 sm:$0xff]   ;;  %v2345_v1 = vld [vmem:[%s3078_s6 + $0x1e0] ss:$16 sps:$4 sm:$0xff]   ;;  %v2348_v2 = vld [vmem:[%s3078_s6 + $0x1e8] ss:$16 sps:$4 sm:$0xff]   ;;  %1331 = vmatprep.subr.bf16.mxu1 %v2347_v63 }
  0xfc   :  { %v2351_v3 = vld [vmem:[%s3080_s8 + $0x40] sm:$0xff]   ;;  %v2912_v5 = vadd.s32 128, %v2787_v51  ;;  %v2363_v61 = vld [vmem:[%s3080_s8 + $0x58] sm:$0xff]  }
  0xfd   :  { %1332 = vmatpush1.bf16.msra.mxu1 %v2345_v1  ;;  %v2365_v63 = vld [vmem:[%s3080_s8 + $0x18] sm:$0xff]   ;;  %v2367_v1 = vld [vmem:[%s3080_s8 + $0x60] sm:$0xff]  }
  0xfe   :  { %2100 = vmatprep.subr.bf16.mxu1 %v2351_v3  ;;  %v2369_v3 = vld [vmem:[%s3080_s8 + $0x20] sm:$0xff]  }
 0x115   :  { %v2085_v13 = vpop.f32.mrb[4].mxu0 }
 0x116   :  { %v2086_v15 = vpop.f32.mrb[5].mxu0 }
 0x117   :  { %v2087_v16 = vadd.f32 %v2086_v15, %v2085_v13  ;;  %v2088_v17 = vpop.f32.mrb[6].mxu0  ;;  %v678_v18 = vpop.f32.mrb[4].mxu1 }
 0x118   :  { %v2089_v19 = vpop.f32.mrb[7].mxu0  ;;  %v2162_v20 = vpop.f32.mrb[5].mxu1 }
 0x119   :  { %v639_v21 = vadd.f32 %v2087_v16, %v599_v6  ;;  %v681_v22 = vpop.f32.mrb[6].mxu1  ;;  %v862_v6 = vmul.u32 256, %v2785_v50 }
 0x11a   :  { %v2163_v24 = vpop.f32.mrb[7].mxu1 }
 0x11b   :  { %v679_v25 = vadd.f32 %v678_v18, %v639_v21  ;;  %v864_v7 = vadd.s32 %v862_v6, %v2912_v5  ;;  %v863_v8 = vadd.s32 %v862_v6, %v2787_v51  ;;  %v2371_v6 = vld [vmem:[%s3080_s8 + $0x68] sm:$0xff]  }
 0x11d   :  { %v684_v26 = vmax.f32 %v679_v25, 0.0  ;;  %v866_v9 = vadd.s32 %v864_v7, %v2794_v54  ;;  %v865_v10 = vadd.s32 %v863_v8, %v2794_v54  ;;  %v2372_v7 = vld [vmem:[%s3080_s8 + $0xe8] sm:$0xff]  }
 0x11e   :  { %v2373_v8 = vld [vmem:[%s3080_s8 + $0x28] sm:$0xff]  }
 0x11f   :  { %v707_v27 = vmul.f32 1.4285715, %v684_v26  ;;  %v868_v11 = vadd.s32 198677718, %v866_v9  ;;  %v867_v12 = vadd.s32 198677718, %v865_v10 }
 0x120   :  { %v730_v26 = vsub.s32 0, %v2785_v50  ;;  %v2374_v9 = vld [vmem:[%s3080_s8 + $0xa8] sm:$0xff]   ;;  %v2375_v10 = vld [vmem:[%s3080_s8 + $0x70] sm:$0xff]  }
 0x121   :  { %v1902_v29 = vpack.c.bf16 %v707_v27, %v707_v27  ;;  %v870_v13 = vshrl.u32 %v868_v11, 16  ;;  %v869_v14 = vshrl.u32 %v867_v12, 16 }
 0x123   :  { %1903 = vmatmul.mubr.msk.bf16.vlgmr.msra.gmra.mrb[8].mxu0 %vm1901_vm2, %v1902_v29  ;;  %v872_v15 = vxor.u32 %v870_v13, %v868_v11  ;;  %v871_v16 = vxor.u32 %v869_v14, %v867_v12  ;;  %v734_v29 = vsub.s32 1, %v2785_v50  ;;  %v2376_v11 = vld [vmem:[%s3080_s8 + $0xf0] sm:$0xff]   ;;  %v2379_v14 = vld [vmem:[%s3080_s8 + $0x78] sm:$0xff]  }
 0x124   :  { %1343 = vmatpush1.bf16.msra.mxu0 %v2258_v28  ;;  %v726_v28 = vld [vmem:[%s3077_s5] sm:$0x3]  ;;  %v2377_v12 = vld [vmem:[%s3080_s8 + $0x30] sm:$0xff]  }
 0x125   :  { %1344 = vmatprep.subr.bf16.mxu0 %v2266_v30  ;;  %v874_v17 = vmul.u32 2146121005, %v872_v15  ;;  %v873_v18 = vmul.u32 2146121005, %v871_v16  ;;  %v2378_v13 = vld [vmem:[%s3080_s8 + $0xb0] sm:$0xff]   ;;  %v2380_v15 = vld [vmem:[%s3080_s8 + $0xf8] sm:$0xff]  }
 0x126   :  { %v2381_v16 = vld [vmem:[%s3080_s8 + $0x38] sm:$0xff]  }
 0x127   :  { %v876_v19 = vshrl.u32 %v874_v17, 15  ;;  %v875_v20 = vshrl.u32 %v873_v18, 15 }
 0x128   :  { %1345 = vmatpush1.bf16.msra.mxu0 %v2264_v31  ;;  %v731_v31 = vrot.slane %v726_v28, %v730_v26 }
 0x129   :  { %1346 = vmatprep.subr.bf16.mxu0 %v2272_v32  ;;  %v878_v21 = vxor.u32 %v876_v19, %v874_v17  ;;  %v877_v22 = vxor.u32 %v875_v20, %v873_v18  ;;  %v2382_v17 = vld [vmem:[%s3080_s8 + $0xb8] sm:$0xff]   ;;  %v1389_v18 = vmul.u32 512, %v2785_v50  ;;  %v1388_v19 = vadd.s32 384, %v2787_v51 }
 0x12a   :  { %v1387_v20 = vadd.s32 256, %v2787_v51 }
 0x12b   :  { %v880_v23 = vmul.u32 2221713035, %v878_v21  ;;  %v879_v24 = vmul.u32 2221713035, %v877_v22  ;;  %v1391_v21 = vadd.s32 %v1389_v18, %v2912_v5  ;;  %v1393_v22 = vadd.s32 %v1389_v18, %v1388_v19 }
 0x12c   :  { %1347 = vmatpush1.bf16.msra.mxu0 %v2270_v33  ;;  %v735_v33 = vrot.slane %v726_v28, %v734_v29 }
 0x12d   :  { %1348 = vmatprep.subr.bf16.mxu0 %v2278_v34  ;;  %v882_v25 = vshrl.u32 %v880_v23, 16  ;;  %v881_v27 = vshrl.u32 %v879_v24, 16 }
 0x12f   :  { %v884_v30 = vxor.u32 %v882_v25, %v880_v23  ;;  %v883_v32 = vxor.u32 %v881_v27, %v879_v24  ;;  %v1390_v23 = vadd.s32 %v1389_v18, %v2787_v51  ;;  %v1392_v24 = vadd.s32 %v1389_v18, %v1387_v20 }
 0x130   :  { %1349 = vmatpush1.bf16.msra.mxu0 %v2276_v35  ;;  %v1395_v25 = vadd.s32 %v1391_v21, %v2794_v54  ;;  %v1397_v27 = vadd.s32 %v1393_v22, %v2794_v54 }
 0x131   :  { %1350 = vmatprep.subr.bf16.mxu0 %v2284_v36  ;;  %v886_v35 = vshrl.u32 %v884_v30, 8  ;;  %v1394_v28 = vadd.s32 %v1390_v23, %v2794_v54  ;;  %v1396_v30 = vadd.s32 %v1392_v24, %v2794_v54 }
 0x133   :  { %vm888_vm3 = vcmp.ge.u32.totalorder %v886_v35, 5033165 }
 0x134   :  { %1351 = vmatpush1.bf16.msra.mxu0 %v2282_v37  ;;  %vm1968_vm5 = vmpackc.low %vm888_vm3, %vm888_vm3 }
 0x135   :  { %1352 = vmatprep.subr.bf16.mxu0 %v2290_v38  ;;  %v885_v38 = vshrl.u32 %v883_v32, 8  ;;  %v1401_v32 = vadd.s32 2445500225, %v1397_v27 }
 0x137   :  { %vm887_vm4 = vcmp.ge.u32.totalorder %v885_v38, 5033165 }
 0x138   :  { %1353 = vmatpush1.bf16.msra.mxu0 %v2288_v39  ;;  %vm1971_vm6 = vmpackc.low %vm887_vm4, %vm887_vm4 }
 0x139   :  { %1354 = vmatprep.subr.bf16.mxu0 %v2296_v40 }
 0x13c   :  { %1355 = vmatpush1.bf16.msra.mxu0 %v2294_v41 }
 0x13d   :  { %1356 = vmatprep.subr.bf16.mxu0 %v2302_v42 }
 0x140   :  { %1357 = vmatpush1.bf16.msra.mxu0 %v2300_v43 }
 0x141   :  { %1358 = vmatprep.subr.bf16.mxu0 %v2308_v44 }
 0x144   :  { %1359 = vmatpush1.bf16.msra.mxu0 %v2306_v45 }
 0x145   :  { %1360 = vmatprep.subr.bf16.mxu0 %v2314_v46 }
 0x148   :  { %1361 = vmatpush1.bf16.msra.mxu0 %v2312_v47  ;;  %v2353_v47 = vld [vmem:[%s3080_s8] sm:$0xff]  }
 0x149   :  { %1362 = vmatprep.subr.bf16.mxu0 %v2320_v48  ;;  %v2354_v48 = vld [vmem:[%s3080_s8 + $0x80] sm:$0xff]  }
 0x14c   :  { %1363 = vmatpush1.bf16.msra.mxu0 %v2318_v49 }
 0x14d   :  { %1364 = vmatprep.subr.bf16.mxu0 %v2326_v52  ;;  %v2355_v52 = vld [vmem:[%s3080_s8 + $0x48] sm:$0xff]  }
 0x150   :  { %1365 = vmatpush1.bf16.msra.mxu0 %v2324_v53  ;;  %v2356_v53 = vld [vmem:[%s3080_s8 + $0xc8] sm:$0xff]  }
 0x151   :  { %1366 = vmatprep.subr.bf16.mxu0 %v2332_v55  ;;  %v2357_v55 = vld [vmem:[%s3080_s8 + $0x8] sm:$0xff]  }
 0x154   :  { %1367 = vmatpush1.bf16.msra.mxu0 %v2330_v56  ;;  %v2358_v56 = vld [vmem:[%s3080_s8 + $0x88] sm:$0xff]  }
 0x155   :  { %1368 = vmatprep.subr.bf16.mxu0 %v2338_v57  ;;  %v2359_v57 = vld [vmem:[%s3080_s8 + $0x50] sm:$0xff]  }
 0x158   :  { %1369 = vmatpush1.bf16.msra.mxu0 %v2336_v58  ;;  %v2360_v58 = vld [vmem:[%s3080_s8 + $0xd0] sm:$0xff]  }
 0x159   :  { %1370 = vmatprep.subr.bf16.mxu0 %v2344_v60  ;;  %v2362_v60 = vld [vmem:[%s3080_s8 + $0x90] sm:$0xff]  }
 0x15c   :  { %1371 = vmatpush1.bf16.msra.mxu0 %v2342_v62  ;;  %v2364_v62 = vld [vmem:[%s3080_s8 + $0xd8] sm:$0xff]  }
 0x15d   :  { %1372 = vmatprep.subr.bf16.mxu0 %v2350_v0  ;;  %v2366_v0 = vld [vmem:[%s3080_s8 + $0x98] sm:$0xff]  }
 0x160   :  { %1373 = vmatpush1.bf16.msra.mxu0 %v2348_v2  ;;  %v2368_v2 = vld [vmem:[%s3080_s8 + $0xe0] sm:$0xff]  }
 0x161   :  { %2122 = vmatprep.subr.bf16.mxu0 %v2352_v4  ;;  %v2370_v4 = vld [vmem:[%s3080_s8 + $0xa0] sm:$0xff]  }
 0x1f6   :  { %v852_v34 = vpop.f32.mrb[8].mxu0 }
 0x1f7   :  { %v853_v36 = vadd.f32 %v852_v34, %v731_v31  ;;  %v854_v37 = vpop.f32.mrb[9].mxu0  ;;  %v1399_v31 = vadd.s32 2445500225, %v1395_v25  ;;  %v1400_v34 = vadd.s32 2445500225, %v1396_v30 }
 0x1f8   :  { %v855_v39 = vadd.f32 %v854_v37, %v735_v33  ;;  %v856_v40 = vpop.f32.mrb[10].mxu0  ;;  %v1398_v33 = vadd.s32 2445500225, %v1394_v28 }
 0x1f9   :  { %v859_v41 = vmax.f32 %v853_v36, 0.0  ;;  %v857_v42 = vpop.f32.mrb[11].mxu0  ;;  %v1403_v35 = vshrl.u32 %v1399_v31, 16  ;;  %v1405_v36 = vshrl.u32 %v1401_v32, 16  ;;  %v1404_v5 = vshrl.u32 %v1400_v34, 16 }
 0x1fa   :  { %v860_v43 = vmax.f32 %v855_v39, 0.0  ;;  %v1402_v37 = vshrl.u32 %v1398_v33, 16 }
 0x1fb   :  { %v889_v44 = vmul.f32 1.4285715, %v859_v41  ;;  %v1407_v38 = vxor.u32 %v1403_v35, %v1399_v31  ;;  %v1409_v39 = vxor.u32 %v1405_v36, %v1401_v32  ;;  %v1408_v40 = vxor.u32 %v1404_v5, %v1400_v34 }
 0x1fc   :  { %v890_v45 = vmul.f32 1.4285715, %v860_v43  ;;  %v1406_v51 = vxor.u32 %v1402_v37, %v1398_v33 }
 0x1fd   :  { %v1972_v49 = vpack.c.bf16 %v889_v44, %v889_v44  ;;  %v1411_v41 = vmul.u32 2146121005, %v1407_v38  ;;  %v1413_v42 = vmul.u32 2146121005, %v1409_v39 }
 0x1fe   :  { %v1969_v46 = vpack.c.bf16 %v890_v45, %v890_v45  ;;  %v1410_v43 = vmul.u32 2146121005, %v1406_v51  ;;  %v1412_v44 = vmul.u32 2146121005, %v1408_v40 }
 0x1ff   :  { %v1415_v45 = vshrl.u32 %v1411_v41, 15 }
 0x200   :  { %1970 = vmatprep.mubr.msk.bf16.mxu1 %vm1968_vm5, %v1969_v46  ;;  %1976 = vmatprep.mubr.msk.bf16.mxu0 %vm1968_vm5, %v1969_v46  ;;  %v1417_v46 = vshrl.u32 %v1413_v42, 15  ;;  %v1416_v54 = vshrl.u32 %v1412_v44, 15 }
 0x201   :  { %1973 = vmatmul.mubr.msk.bf16.vlgmr.msra.gmra.mrb[8].mxu1 %vm1971_vm6, %v1972_v49  ;;  %1979 = vmatmul.mubr.msk.bf16.vlgmr.msra.gmra.mrb[12].mxu0 %vm1971_vm6, %v1972_v49 }
 0x202   :  { %2101 = vmatpush3.bf16.msra.mxu1 %v2353_v47  ;;  %2123 = vmatpush3.bf16.msra.mxu0 %v2354_v48  ;;  %v1414_v47 = vshrl.u32 %v1410_v43, 15  ;;  %v1419_v48 = vxor.u32 %v1415_v45, %v1411_v41  ;;  %v1421_v49 = vxor.u32 %v1417_v46, %v1413_v42  ;;  %v1980_v41 = vld [vmem:[%s3081_s9] ss:$0 sm:$0xff]  ;;  %s2414_s9 = smov [#allocation3]  }
 0x203   :  { %2102 = vmatprep.subr.bf16.mxu1 %v2355_v52  ;;  %2124 = vmatprep.subr.bf16.mxu0 %v2356_v53  ;;  %v1420_v53 = vxor.u32 %v1416_v54, %v1412_v44  ;;  %s1813_s20 = sshll.u32 %s2414_s9, 4  ;;  %s1814_s20 = int_to_ptr.vmem [resolvable:$true] %s1813_s20 }
 0x204   :  { %v1418_v52 = vxor.u32 %v1414_v47, %v1410_v43  ;;  %s2387_s21 = scalar_lea.vmem %s1814_s20, 128  ;;  %p2392_p1 = scmp.lt.s32.totalorder %s1814_s20, %s1814_s20 }
 0x205   :  { %p2388_p0 = scmp.ne.s32.totalorder %s1814_s20, %s2387_s21  ;;  %p2393_p2 = scmp.lt.s32.totalorder %s2387_s21, %s2387_s21 }
 0x206   :  { %2103 = vmatpush3.bf16.msra.mxu1 %v2357_v55  ;;  %2125 = vmatpush3.bf16.msra.mxu0 %v2358_v56  ;;  %v1423_v55 = vmul.u32 2221713035, %v1419_v48  ;;  %v1425_v56 = vmul.u32 2221713035, %v1421_v49 }
 0x207   :  { %2104 = vmatprep.subr.bf16.mxu1 %v2359_v57  ;;  %2126 = vmatprep.subr.bf16.mxu0 %v2360_v58  ;;  %v1422_v57 = vmul.u32 2221713035, %v1418_v52  ;;  %v1424_v58 = vmul.u32 2221713035, %v1420_v53  ;;  %p2394_p3 = por %p2393_p2, %p2392_p1 }
 0x209   :  { %p2395_p4 = pnand %p2394_p3, %p2388_p0 }
 0x20a   :  { %2105 = vmatpush3.bf16.msra.mxu1 %v2361_v59  ;;  %2127 = vmatpush3.bf16.msra.mxu0 %v2362_v60  ;;  %v1427_v59 = vshrl.u32 %v1423_v55, 16  ;;  %v1429_v60 = vshrl.u32 %v1425_v56, 16 }
 0x20b   :  { %2106 = vmatprep.subr.bf16.mxu1 %v2363_v61  ;;  %2128 = vmatprep.subr.bf16.mxu0 %v2364_v62  ;;  %v1426_v61 = vshrl.u32 %v1422_v57, 16  ;;  %v971_v62 = vsub.s32 2, %v2785_v50 }
 0x20e   :  { %2107 = vmatpush3.bf16.msra.mxu1 %v2365_v63  ;;  %2129 = vmatpush3.bf16.msra.mxu0 %v2366_v0  ;;  %v1428_v63 = vshrl.u32 %v1424_v58, 16  ;;  %v959_v0 = vld [vmem:[%s3079_s7] sm:$0xf] }
 0x20f   :  { %2108 = vmatprep.subr.bf16.mxu1 %v2367_v1  ;;  %2130 = vmatprep.subr.bf16.mxu0 %v2368_v2  ;;  %v975_v1 = vsub.s32 3, %v2785_v50  ;;  %v1431_v2 = vxor.u32 %v1427_v59, %v1423_v55 }
 0x212   :  { %2109 = vmatpush3.bf16.msra.mxu1 %v2369_v3  ;;  %2131 = vmatpush3.bf16.msra.mxu0 %v2370_v4  ;;  %v1433_v3 = vxor.u32 %v1429_v60, %v1425_v56  ;;  %v1430_v4 = vxor.u32 %v1426_v61, %v1422_v57 }
 0x213   :  { %2110 = vmatprep.subr.bf16.mxu1 %v2371_v6  ;;  %2132 = vmatprep.subr.bf16.mxu0 %v2372_v7  ;;  %v964_v6 = vrot.slane %v959_v0, %v730_v26  ;;  %v972_v7 = vrot.slane %v959_v0, %v971_v62 }
 0x216   :  { %2111 = vmatpush3.bf16.msra.mxu1 %v2373_v8  ;;  %2133 = vmatpush3.bf16.msra.mxu0 %v2374_v9  ;;  %v1432_v8 = vxor.u32 %v1428_v63, %v1424_v58  ;;  %v968_v9 = vrot.slane %v959_v0, %v734_v29 }
 0x217   :  { %2112 = vmatprep.subr.bf16.mxu1 %v2375_v10  ;;  %2134 = vmatprep.subr.bf16.mxu0 %v2376_v11  ;;  %v976_v10 = vrot.slane %v959_v0, %v975_v1  ;;  %v1435_v11 = vshrl.u32 %v1431_v2, 8 }
 0x218   :  { %v1436_v20 = vshrl.u32 %v1432_v8, 8 }
 0x219   :  { %vm3036_vm7 = vcmp.ge.u32.totalorder %v1435_v11, 5033165 }
 0x21a   :  { %2113 = vmatpush3.bf16.msra.mxu1 %v2377_v12  ;;  %2135 = vmatpush3.bf16.msra.mxu0 %v2378_v13  ;;  %v1437_v12 = vshrl.u32 %v1433_v3, 8  ;;  %vm2013_vm10 = vmpackc.low %vm3036_vm7, %vm3036_vm7  ;;  %vm1440_vm11 = vcmp.ge.u32.totalorder %v1436_v20, 5033165 }
 0x21b   :  { %2114 = vmatprep.subr.bf16.mxu1 %v2379_v14  ;;  %2136 = vmatprep.subr.bf16.mxu0 %v2380_v15  ;;  %v1434_v15 = vshrl.u32 %v1430_v4, 8  ;;  %vm2022_vm14 = vmpackc.low %vm1440_vm11, %vm1440_vm11 }
 0x21c   :  { %vm3040_vm8 = vcmp.ge.u32.totalorder %v1437_v12, 5033165 }
 0x21d   :  { %vm3044_vm9 = vcmp.ge.u32.totalorder %v1434_v15, 5033165  ;;  %vm2019_vm12 = vmpackc.low %vm3040_vm8, %vm3040_vm8 }
 0x21e   :  { %2115 = vmatpush3.bf16.msra.mxu1 %v2381_v16  ;;  %2137 = vmatpush3.bf16.msra.mxu0 %v2382_v17  ;;  %vm2016_vm13 = vmpackc.low %vm3044_vm9, %vm3044_vm9 }
 0x2d4   :  { %v1335_v13 = vpop.f32.mrb[8].mxu1  ;;  %v1376_v14 = vpop.f32.mrb[12].mxu0 }
 0x2d5   :  { %v1336_v16 = vadd.f32 %v1335_v13, %v964_v6  ;;  %v1377_v17 = vadd.f32 %v1376_v14, %v972_v7  ;;  %v1337_v18 = vpop.f32.mrb[9].mxu1  ;;  %v1378_v19 = vpop.f32.mrb[13].mxu0 }
 0x2d6   :  { %v1338_v21 = vadd.f32 %v1337_v18, %v968_v9  ;;  %v1379_v22 = vadd.f32 %v1378_v19, %v976_v10  ;;  %v1339_v23 = vpop.f32.mrb[10].mxu1  ;;  %v1380_v26 = vpop.f32.mrb[14].mxu0 }
 0x2d7   :  { %v1383_v50 = vmax.f32 %v1336_v16, 0.0  ;;  %v1385_v29 = vmax.f32 %v1377_v17, 0.0  ;;  %v1340_v25 = vpop.f32.mrb[11].mxu1  ;;  %v1381_v27 = vpop.f32.mrb[15].mxu0 }
 0x2d8   :  { %v1384_v30 = vmax.f32 %v1338_v21, 0.0  ;;  %v1386_v31 = vmax.f32 %v1379_v22, 0.0 }
 0x2d9   :  { %v1442_v33 = vmul.f32 1.4285715, %v1383_v50  ;;  %v1444_v34 = vmul.f32 1.4285715, %v1385_v29 }
 0x2da   :  { %v1443_v35 = vmul.f32 1.4285715, %v1384_v30  ;;  %v1445_v36 = vmul.f32 1.4285715, %v1386_v31 }
 0x2db   :  { %v2017_v38 = vpack.c.bf16 %v1442_v33, %v1442_v33  ;;  %v2023_v39 = vpack.c.bf16 %v1444_v34, %v1444_v34 }
 0x2dc   :  { %v2014_v37 = vpack.c.bf16 %v1443_v35, %v1443_v35  ;;  %v2020_v5 = vpack.c.bf16 %v1445_v36, %v1445_v36 }
 0x2de   :  { %2015 = vmatprep.mubr.msk.bf16.mxu1 %vm2013_vm10, %v2014_v37  ;;  %2021 = vmatprep.mubr.msk.bf16.mxu0 %vm2019_vm12, %v2020_v5 }
 0x2df   :  { %2018 = vmatmul.mubr.msk.bf16.vlgmr.msra.gmra.mrb[12].mxu1 %vm2016_vm13, %v2017_v38  ;;  %2024 = vmatmul.mubr.msk.bf16.vlgmr.msra.gmra.mrb[16].mxu0 %vm2022_vm14, %v2023_v39 }
 0x3b2   :  { %v2116_v51 = vpop.f32.mrb[12].mxu1  ;;  %v2138_v40 = vpop.f32.mrb[16].mxu0 }
 0x3b3   :  { %v2117_v42 = vpop.f32.mrb[13].mxu1  ;;  %v2139_v43 = vpop.f32.mrb[17].mxu0 }
 0x3b4   :  { %v2118_v44 = vadd.f32 %v2117_v42, %v2116_v51  ;;  %v2140_v45 = vadd.f32 %v2139_v43, %v2138_v40  ;;  %v2119_v46 = vpop.f32.mrb[14].mxu1  ;;  %v2141_v47 = vpop.f32.mrb[18].mxu0 }
 0x3b5   :  { %v2120_v54 = vpop.f32.mrb[15].mxu1  ;;  %v2142_v48 = vpop.f32.mrb[19].mxu0 }
 0x3b6   :  { %v1752_v49 = vadd.f32 %v2118_v44, %v1980_v41 }
 0x3b8   :  { %v1792_v52 = vadd.f32 %v2140_v45, %v1752_v49 }
 0x3ba   :  { %1797 = vmax.xlane.f32.xlu0 %v1792_v52 }
 0x447   :  { %v1798_v53 = vpop.xlane.xlu0 %1797 }
 0x448   :  { %v1799_v55 = vsub.f32 %v1792_v52, %v1798_v53 }
 0x44a   :  { %v1800_v56 = vmul.f32 1.442695, %v1799_v55 }
 0x44c   :  { %2383 = vpow2.f32 %v1800_v56 }
 0x456   :  { %v2384_v57 = vpop.eup %2383 }
 0x457   :  { %1802 = vadd.xlane.f32.xlu0 %v2384_v57 }
 0x4e4   :  { %v1803_v58 = vpop.xlane.xlu0 %1802 }
 0x4e5   :  { %2385 = vrcp.f32 %v1803_v58 }
 0x4ef   :  { %v2386_v59 = vpop.eup %2385 }
 0x4f0   :  { %v1805_v60 = vmul.f32 %v2386_v59, %v2384_v57 }
 0x4f2   :  { %1806 = vst [vmem:[#allocation3] sm:$0xff] %v1805_v60 }
 0x4f3   :  { %2398 = shalt.err (!%p2395_p4)
}
 0x4f4   :  { %s2399_s24 = scalar_lea.hbm %s3082_s10, 128 }
 0x4f5   :  { %p2400_p5 = scmp.ne.s32.totalorder %s3082_s10, %s2399_s24  ;;  %p2403_p6 = scmp.lt.u32.totalorder %s2399_s24, %s3082_s10 }
 0x4f7   :  { %p2405_p7 = pnand %p2403_p6, %p2400_p5 }
 0x4f9   :  { %2408 = shalt.err (!%p2405_p7)
}
 0x4fa   :  { %1816 = dma.vmem_to_hbm [thread:$0]  %s1814_s20, 128, %s3082_s10, [#allocation4]  }
 0x4fb   :  { %2409 = dma.done.wait [#allocation4], 128  }
 0x4fc   :  { %2410 = vsyncadd [#allocation4], 4294967168 }
 0x4fd   :  { %1820 = vsyncpa [#allocation4], 1 }

</bundles_post_ra>
